<compile_context>
chip_gen: v5e
topology: v5e:2x2
jax: 0.10.0
libtpu: 0.0.40
codegen_flags: <defaults>
</compile_context>

<pallas_src>
import functools

import jax
import jax.numpy as jnp
from jax.experimental import pallas as pl
from jax.experimental.pallas import tpu as pltpu


def _round_up(v, m):
    return ((v + m - 1) // m) * m


@functools.lru_cache(maxsize=None)
def _roll_mode():
    """Probe pltpu.roll's lane-rotation sign convention once per process.

    Returns "jnp" if pltpu.roll(x, s)[i] == x[(i - s) % L]  (jnp.roll-like),
            "inv" if pltpu.roll(x, s)[i] == x[(i + s) % L],
            None  if pltpu.roll is unusable -> use the concat fallback.
    """
    def probe_kernel(x_ref, o_ref):
        o_ref[...] = pltpu.roll(x_ref[...], shift=1, axis=1)

    try:
        x = jnp.arange(256, dtype=jnp.float32).reshape(2, 128)
        y = pl.pallas_call(
            probe_kernel,
            out_shape=jax.ShapeDtypeStruct((2, 128), jnp.float32),
        )(x)
        v = int(jax.device_get(y[0, 0]))
        if v == 127:
            return "jnp"
        if v == 1:
            return "inv"
    except Exception:
        return None
    return None


def _rotate_left(arr, c, mode):
    """Lane rotation: result[:, i] = arr[:, (i + c) % L]."""
    width = arr.shape[-1]
    c = c % width
    if c == 0:
        return arr
    if mode is not None and width % 128 == 0:
        shift = (width - c) if mode == "jnp" else c
        return pltpu.roll(arr, shift=shift, axis=1)
    # Fallback: two unit-stride slices + concat (known to lower on Mosaic).
    return jnp.concatenate([arr[:, c:], arr[:, :c]], axis=1)


def _maxpool_kernel(x_ref, o_ref, *, factor, width, win_cols, groups, n_out,
                    roll_mode):
    """Max-pool one block of kernel rows.

    x_ref : (BR, groups * factor * width) -- each kernel row packs `groups`
            pooled output rows = groups*factor consecutive image rows of width
            `width` (only the first win_cols = Wo*factor columns are used).
    o_ref : (BR, n_out) with n_out = groups * Wo.
    """
    f = factor

    # (1) Vertical max per pooled row, gathered side by side.  Slices start on
    #     image-row boundaries (multiples of `width`).
    parts = []
    for j in range(groups):
        base = j * f * width
        seg = x_ref[:, base:base + win_cols]
        for r in range(1, f):
            lo = base + r * width
            seg = jnp.maximum(seg, x_ref[:, lo:lo + win_cols])
        parts.append(seg)
    rm = parts[0] if groups == 1 else jnp.concatenate(parts, axis=1)
    # rm: (BR, f * n_out); pooled window m (= j*Wo + q) occupies lanes
    # [f*m, f*m + f).

    # (2) Horizontal max: lane f*m <- max over the f lanes of window m.
    cm = rm
    for c in range(1, f):
        cm = jnp.maximum(cm, _rotate_left(rm, c, roll_mode))

    # (3) Compact lane 2*m -> lane m (f == 2), LSB-first binary shifts.
    #     At step s = 2^k the movers are windows m with bit k set; their
    #     destination lanes are exactly {d : d mod 4s in [s, 2s)}, and no live
    #     non-mover ever sits on a destination lane (collision-free).
    lane = jax.lax.broadcasted_iota(jnp.int32, (1, f * n_out), 1)
    s = 1
    while s < n_out:
        lm = lane & (4 * s - 1)
        take = (lm >= s) & (lm < 2 * s)
        cm = jnp.where(take, _rotate_left(cm, s, roll_mode), cm)
        s *= 2

    o_ref[...] = cm[:, :n_out].astype(o_ref.dtype)


def _vmem_budgets():
    """(vmem_limit_bytes, per-block budget): larger on 128 MiB-VMEM chips
    (v5e/v6e), conservative on v7x (64 MiB)."""
    cap = 64 * 1024 * 1024                      # conservative default
    try:
        cap = int(pltpu.get_tpu_info().vmem_capacity_bytes)
    except Exception:
        pass
    return min(cap // 2, 96 * 1024 * 1024), max(cap // 8, 4 * 1024 * 1024)


def _choose_group(n_pool_rows, w_out, factor, width, itemsize,
                  max_row_bytes=512 * 1024):
    """Pooled output rows packed per kernel row.

    Targets a lane-dense (>= 128) output row while keeping the input view a
    free contiguous reshape (g must divide N*C*Ho) and the row a modest size.
    """
    target = -(-128 // max(w_out, 1))
    best = 1
    for g in range(1, n_pool_rows + 1):
        if n_pool_rows % g:
            continue
        if g * factor * width * itemsize > max_row_bytes:
            break
        best = g
        if g >= target:
            break
    return best


def _choose_block_rows(total_rows, in_lanes, out_lanes, itemsize, sublane,
                       block_budget_bytes):
    """Kernel rows per grid step: as large as comfortably fits the
    double-buffered VMEM budget, keeping >= 4 grid steps (>= 2 per v7x
    TensorCore) when there are enough rows, rounded to the dtype's packed
    sublane multiple."""
    per_row = (2 * _round_up(in_lanes, 128)          # double-buffered input
               + 2 * _round_up(out_lanes, 128)       # double-buffered output
               + 4 * _round_up(2 * out_lanes, 128)   # in-kernel temporaries
               ) * itemsize
    rows = max(sublane, block_budget_bytes // per_row)
    if total_rows >= 4 * sublane:
        rows = min(rows, max(sublane,
                             (total_rows // (4 * sublane)) * sublane))
    rows = max(sublane, (rows // sublane) * sublane)
    return int(min(rows, total_rows))


def downscale(x, factor=2):
    """nn.MaxPool2d(kernel_size=factor, stride=factor) on an NCHW tensor."""
    f = int(factor)
    if f != 2:
        raise NotImplementedError("Down uses MaxPool2d(2); only factor=2 is supported.")
    N, C, H, W = x.shape
    if H < f or W < f:
        raise ValueError("spatial dims must be >= the pooling factor")
    Ho, Wo = H // f, W // f
    Wc = Wo * f

    if H % f:
        # Rare odd-H case (PyTorch floor semantics): crop.  This materializes a
        # copy; the common even-H path below is a pure contiguous reshape.
        # TODO(synk): avoid this copy by per-channel row indexing if it matters.
        x = x[:, :, :Ho * f, :]
        H = Ho * f
    # Odd W is handled *inside* the kernel (slices stop at Wc): no column crop,
    # no hidden HBM copy.

    itemsize = jnp.dtype(x.dtype).itemsize
    sublane = max(8, 32 // itemsize)            # 8 f32 / 16 bf16 / 32 int8
    n_pool_rows = N * C * Ho

    g = _choose_group(n_pool_rows, Wo, f, W, itemsize)
    rows = n_pool_rows // g
    row_w = g * f * W
    n_out = g * Wo

    xv = x.reshape(rows, row_w)                 # free: NCHW contiguous, g*f | N*C*H

    vmem_limit, block_budget = _vmem_budgets()
    br = _choose_block_rows(rows, row_w, n_out, itemsize, sublane, block_budget)

    kernel = functools.partial(
        _maxpool_kernel, factor=f, width=W, win_cols=Wc, groups=g,
        n_out=n_out, roll_mode=_roll_mode())

    out = pl.pallas_call(
        kernel,
        out_shape=jax.ShapeDtypeStruct((rows, n_out), x.dtype),
        grid=(pl.cdiv(rows, br),),
        in_specs=[pl.BlockSpec((br, row_w), lambda i: (i, 0))],
        out_specs=pl.BlockSpec((br, n_out), lambda i: (i, 0)),
        compiler_params=pltpu.CompilerParams(
            dimension_semantics=("parallel",),
            vmem_limit_bytes=int(vmem_limit),
        ),
    )(xv)

    # TODO(synk): the DoubleConv stage of `Down` (3x3 Conv2d -> BatchNorm ->
    # ReLU, x2) is not implemented; in the reference module its forward()
    # returns None, so the MaxPool2d(2) stage is the meaningful computation.
    return out.reshape(N, C, Ho, Wo)


if __name__ == "__main__":
    key = jax.random.PRNGKey(0)
    k1, k2 = jax.random.split(key)

    # Primary check: NCHW input consistent with the module's forward.
    x = jax.random.normal(k1, (2, 4, 16, 16), dtype=jnp.float32)
    y = jax.block_until_ready(downscale(x, factor=2))
    ref = x.reshape(2, 4, 8, 2, 8, 2).max(axis=(3, 5))
    assert y.shape == (2, 4, 8, 8), y.shape
    assert y.dtype == x.dtype, y.dtype
    assert bool(jnp.array_equal(y, ref)), "Pallas maxpool mismatch vs reference"

    # Secondary check: odd W (tail column ignored, no crop copy) and a
    # non-128-multiple packed width (exercises the concat-rotate fallback and
    # the row-grouping / compaction at a different size).
    x2 = jax.random.normal(k2, (2, 32, 16, 11), dtype=jnp.float32)
    y2 = jax.block_until_ready(downscale(x2, factor=2))
    ref2 = x2[:, :, :, :10].reshape(2, 32, 8, 2, 5, 2).max(axis=(3, 5))
    assert y2.shape == (2, 32, 8, 5), y2.shape
    assert bool(jnp.array_equal(y2, ref2)), "Pallas maxpool mismatch (odd W)"

    print("KERNEL_OK")
</pallas_src>

<mosaic_0001>
module attributes {stable_mosaic.version = 11 : i64} {
  func.func @probe_kernel(%arg0: memref<2x128xf32, #tpu.memory_space<vmem>>, %arg1: memref<2x128xf32, #tpu.memory_space<vmem>>) attributes {dimension_semantics = [], scalar_prefetch = 0 : i64, scratch_operands = 0 : i64, tpu.core_type = #tpu.core_type<tc>} {
    %c0 = arith.constant 0 : index
    %c0_0 = arith.constant 0 : index
    %0 = vector.load %arg0[%c0, %c0_0] : memref<2x128xf32, #tpu.memory_space<vmem>>, vector<2x128xf32>
    %c1_i32 = arith.constant 1 : i32
    %1 = tpu.dynamic_rotate %0 by %c1_i32 dim 1 : vector<2x128xf32>, i32 -> vector<2x128xf32>
    %c0_1 = arith.constant 0 : index
    %c0_2 = arith.constant 0 : index
    %2 = vector.load %arg1[%c0_1, %c0_2] : memref<2x128xf32, #tpu.memory_space<vmem>>, vector<2x128xf32>
    tpu.vector_store %arg1[%c0_1, %c0_2], %1 {strides = array<i32>} : memref<2x128xf32, #tpu.memory_space<vmem>>, vector<2x128xf32>,
    return
  }
}

module attributes {stable_mosaic.version = 11 : i64} {
  func.func @_maxpool_kernel(%arg0: i32, %arg1: memref<4x512xf32, #tpu.memory_space<vmem>>, %arg2: memref<4x128xf32, #tpu.memory_space<vmem>>) attributes {dimension_semantics = [#tpu.dimension_semantics<parallel>], iteration_bounds = array<i64: 1>, scalar_prefetch = 0 : i64, scratch_operands = 0 : i64, tpu.core_type = #tpu.core_type<tc>, window_params = [{transform_indices = @transform_0, window_bounds = array<i64: 4, 512>}, {transform_indices = @transform_1, window_bounds = array<i64: 4, 128>}]} {
    %c0 = arith.constant 0 : index
    %c0_0 = arith.constant 0 : index
    %0 = vector.load %arg1[%c0, %c0_0] : memref<4x512xf32, #tpu.memory_space<vmem>>, vector<4x16xf32>
    %c0_1 = arith.constant 0 : index
    %c16 = arith.constant 16 : index
    %1 = vector.load %arg1[%c0_1, %c16] : memref<4x512xf32, #tpu.memory_space<vmem>>, vector<4x16xf32>
    %2 = arith.maximumf %0, %1 : vector<4x16xf32>
    %c0_2 = arith.constant 0 : index
    %c32 = arith.constant 32 : index
    %3 = vector.load %arg1[%c0_2, %c32] : memref<4x512xf32, #tpu.memory_space<vmem>>, vector<4x16xf32>
    %c0_3 = arith.constant 0 : index
    %c48 = arith.constant 48 : index
    %4 = vector.load %arg1[%c0_3, %c48] : memref<4x512xf32, #tpu.memory_space<vmem>>, vector<4x16xf32>
    %5 = arith.maximumf %3, %4 : vector<4x16xf32>
    %c0_4 = arith.constant 0 : index
    %c64 = arith.constant 64 : index
    %6 = vector.load %arg1[%c0_4, %c64] : memref<4x512xf32, #tpu.memory_space<vmem>>, vector<4x16xf32>
    %c0_5 = arith.constant 0 : index
    %c80 = arith.constant 80 : index
    %7 = vector.load %arg1[%c0_5, %c80] : memref<4x512xf32, #tpu.memory_space<vmem>>, vector<4x16xf32>
    %8 = arith.maximumf %6, %7 : vector<4x16xf32>
    %c0_6 = arith.constant 0 : index
    %c96 = arith.constant 96 : index
    %9 = vector.load %arg1[%c0_6, %c96] : memref<4x512xf32, #tpu.memory_space<vmem>>, vector<4x16xf32>
    %c0_7 = arith.constant 0 : index
    %c112 = arith.constant 112 : index
    %10 = vector.load %arg1[%c0_7, %c112] : memref<4x512xf32, #tpu.memory_space<vmem>>, vector<4x16xf32>
    %11 = arith.maximumf %9, %10 : vector<4x16xf32>
    %c0_8 = arith.constant 0 : index
    %c128 = arith.constant 128 : index
    %12 = vector.load %arg1[%c0_8, %c128] : memref<4x512xf32, #tpu.memory_space<vmem>>, vector<4x16xf32>
    %c0_9 = arith.constant 0 : index
    %c144 = arith.constant 144 : index
    %13 = vector.load %arg1[%c0_9, %c144] : memref<4x512xf32, #tpu.memory_space<vmem>>, vector<4x16xf32>
    %14 = arith.maximumf %12, %13 : vector<4x16xf32>
    %c0_10 = arith.constant 0 : index
    %c160 = arith.constant 160 : index
    %15 = vector.load %arg1[%c0_10, %c160] : memref<4x512xf32, #tpu.memory_space<vmem>>, vector<4x16xf32>
    %c0_11 = arith.constant 0 : index
    %c176 = arith.constant 176 : index
    %16 = vector.load %arg1[%c0_11, %c176] : memref<4x512xf32, #tpu.memory_space<vmem>>, vector<4x16xf32>
    %17 = arith.maximumf %15, %16 : vector<4x16xf32>
    %c0_12 = arith.constant 0 : index
    %c192 = arith.constant 192 : index
    %18 = vector.load %arg1[%c0_12, %c192] : memref<4x512xf32, #tpu.memory_space<vmem>>, vector<4x16xf32>
    %c0_13 = arith.constant 0 : index
    %c208 = arith.constant 208 : index
    %19 = vector.load %arg1[%c0_13, %c208] : memref<4x512xf32, #tpu.memory_space<vmem>>, vector<4x16xf32>
    %20 = arith.maximumf %18, %19 : vector<4x16xf32>
    %c0_14 = arith.constant 0 : index
    %c224 = arith.constant 224 : index
    %21 = vector.load %arg1[%c0_14, %c224] : memref<4x512xf32, #tpu.memory_space<vmem>>, vector<4x16xf32>
    %c0_15 = arith.constant 0 : index
    %c240 = arith.constant 240 : index
    %22 = vector.load %arg1[%c0_15, %c240] : memref<4x512xf32, #tpu.memory_space<vmem>>, vector<4x16xf32>
    %23 = arith.maximumf %21, %22 : vector<4x16xf32>
    %c0_16 = arith.constant 0 : index
    %c256 = arith.constant 256 : index
    %24 = vector.load %arg1[%c0_16, %c256] : memref<4x512xf32, #tpu.memory_space<vmem>>, vector<4x16xf32>
    %c0_17 = arith.constant 0 : index
    %c272 = arith.constant 272 : index
    %25 = vector.load %arg1[%c0_17, %c272] : memref<4x512xf32, #tpu.memory_space<vmem>>, vector<4x16xf32>
    %26 = arith.maximumf %24, %25 : vector<4x16xf32>
    %c0_18 = arith.constant 0 : index
    %c288 = arith.constant 288 : index
    %27 = vector.load %arg1[%c0_18, %c288] : memref<4x512xf32, #tpu.memory_space<vmem>>, vector<4x16xf32>
    %c0_19 = arith.constant 0 : index
    %c304 = arith.constant 304 : index
    %28 = vector.load %arg1[%c0_19, %c304] : memref<4x512xf32, #tpu.memory_space<vmem>>, vector<4x16xf32>
    %29 = arith.maximumf %27, %28 : vector<4x16xf32>
    %c0_20 = arith.constant 0 : index
    %c320 = arith.constant 320 : index
    %30 = vector.load %arg1[%c0_20, %c320] : memref<4x512xf32, #tpu.memory_space<vmem>>, vector<4x16xf32>
    %c0_21 = arith.constant 0 : index
    %c336 = arith.constant 336 : index
    %31 = vector.load %arg1[%c0_21, %c336] : memref<4x512xf32, #tpu.memory_space<vmem>>, vector<4x16xf32>
    %32 = arith.maximumf %30, %31 : vector<4x16xf32>
    %c0_22 = arith.constant 0 : index
    %c352 = arith.constant 352 : index
    %33 = vector.load %arg1[%c0_22, %c352] : memref<4x512xf32, #tpu.memory_space<vmem>>, vector<4x16xf32>
    %c0_23 = arith.constant 0 : index
    %c368 = arith.constant 368 : index
    %34 = vector.load %arg1[%c0_23, %c368] : memref<4x512xf32, #tpu.memory_space<vmem>>, vector<4x16xf32>
    %35 = arith.maximumf %33, %34 : vector<4x16xf32>
    %c0_24 = arith.constant 0 : index
    %c384 = arith.constant 384 : index
    %36 = vector.load %arg1[%c0_24, %c384] : memref<4x512xf32, #tpu.memory_space<vmem>>, vector<4x16xf32>
    %c0_25 = arith.constant 0 : index
    %c400 = arith.constant 400 : index
    %37 = vector.load %arg1[%c0_25, %c400] : memref<4x512xf32, #tpu.memory_space<vmem>>, vector<4x16xf32>
    %38 = arith.maximumf %36, %37 : vector<4x16xf32>
    %c0_26 = arith.constant 0 : index
    %c416 = arith.constant 416 : index
    %39 = vector.load %arg1[%c0_26, %c416] : memref<4x512xf32, #tpu.memory_space<vmem>>, vector<4x16xf32>
    %c0_27 = arith.constant 0 : index
    %c432 = arith.constant 432 : index
    %40 = vector.load %arg1[%c0_27, %c432] : memref<4x512xf32, #tpu.memory_space<vmem>>, vector<4x16xf32>
    %41 = arith.maximumf %39, %40 : vector<4x16xf32>
    %c0_28 = arith.constant 0 : index
    %c448 = arith.constant 448 : index
    %42 = vector.load %arg1[%c0_28, %c448] : memref<4x512xf32, #tpu.memory_space<vmem>>, vector<4x16xf32>
    %c0_29 = arith.constant 0 : index
    %c464 = arith.constant 464 : index
    %43 = vector.load %arg1[%c0_29, %c464] : memref<4x512xf32, #tpu.memory_space<vmem>>, vector<4x16xf32>
    %44 = arith.maximumf %42, %43 : vector<4x16xf32>
    %c0_30 = arith.constant 0 : index
    %c480 = arith.constant 480 : index
    %45 = vector.load %arg1[%c0_30, %c480] : memref<4x512xf32, #tpu.memory_space<vmem>>, vector<4x16xf32>
    %c0_31 = arith.constant 0 : index
    %c496 = arith.constant 496 : index
    %46 = vector.load %arg1[%c0_31, %c496] : memref<4x512xf32, #tpu.memory_space<vmem>>, vector<4x16xf32>
    %47 = arith.maximumf %45, %46 : vector<4x16xf32>
    %48 = tpu.concatenate %2, %5, %8, %11, %14, %17, %20, %23, %26, %29, %32, %35, %38, %41, %44, %47 in 1 : vector<4x16xf32>, vector<4x16xf32>, vector<4x16xf32>, vector<4x16xf32>, vector<4x16xf32>, vector<4x16xf32>, vector<4x16xf32>, vector<4x16xf32>, vector<4x16xf32>, vector<4x16xf32>, vector<4x16xf32>, vector<4x16xf32>, vector<4x16xf32>, vector<4x16xf32>, vector<4x16xf32>, vector<4x16xf32> -> vector<4x256xf32>
    %49 = vector.extract_strided_slice %48 {offsets = [0, 1], sizes = [4, 255], strides = [1, 1]} : vector<4x256xf32> to vector<4x255xf32>
    %50 = vector.extract_strided_slice %48 {offsets = [0, 0], sizes = [4, 1], strides = [1, 1]} : vector<4x256xf32> to vector<4x1xf32>
    %51 = tpu.concatenate %49, %50 in 1 : vector<4x255xf32>, vector<4x1xf32> -> vector<4x256xf32>
    %52 = arith.maximumf %48, %51 : vector<4x256xf32>
    %53 = tpu.iota {dimensions = array<i32: 1>} : vector<1x256xi32>
    %c3_i32 = arith.constant 3 : i32
    %54 = vector.broadcast %c3_i32 : i32 to vector<1x256xi32>
    %55 = arith.andi %53, %54 : vector<1x256xi32>
    %c1_i32 = arith.constant 1 : i32
    %56 = vector.broadcast %c1_i32 : i32 to vector<1x256xi32>
    %57 = arith.cmpi sge, %55, %56 : vector<1x256xi32>
    %c2_i32 = arith.constant 2 : i32
    %58 = vector.broadcast %c2_i32 : i32 to vector<1x256xi32>
    %59 = arith.cmpi slt, %55, %58 : vector<1x256xi32>
    %60 = arith.andi %57, %59 : vector<1x256xi1>
    %61 = vector.extract_strided_slice %52 {offsets = [0, 1], sizes = [4, 255], strides = [1, 1]} : vector<4x256xf32> to vector<4x255xf32>
    %62 = vector.extract_strided_slice %52 {offsets = [0, 0], sizes = [4, 1], strides = [1, 1]} : vector<4x256xf32> to vector<4x1xf32>
    %63 = tpu.concatenate %61, %62 in 1 : vector<4x255xf32>, vector<4x1xf32> -> vector<4x256xf32>
    %64 = vector.shape_cast %60 : vector<1x256xi1> to vector<1x256xi1>
    %65 = vector.broadcast %64 : vector<1x256xi1> to vector<4x256xi1>
    %66 = arith.select %65, %63, %52 : vector<4x256xi1>, vector<4x256xf32>
    %c7_i32 = arith.constant 7 : i32
    %67 = vector.broadcast %c7_i32 : i32 to vector<1x256xi32>
    %68 = arith.andi %53, %67 : vector<1x256xi32>
    %c2_i32_32 = arith.constant 2 : i32
    %69 = vector.broadcast %c2_i32_32 : i32 to vector<1x256xi32>
    %70 = arith.cmpi sge, %68, %69 : vector<1x256xi32>
    %c4_i32 = arith.constant 4 : i32
    %71 = vector.broadcast %c4_i32 : i32 to vector<1x256xi32>
    %72 = arith.cmpi slt, %68, %71 : vector<1x256xi32>
    %73 = arith.andi %70, %72 : vector<1x256xi1>
    %74 = vector.extract_strided_slice %66 {offsets = [0, 2], sizes = [4, 254], strides = [1, 1]} : vector<4x256xf32> to vector<4x254xf32>
    %75 = vector.extract_strided_slice %66 {offsets = [0, 0], sizes = [4, 2], strides = [1, 1]} : vector<4x256xf32> to vector<4x2xf32>
    %76 = tpu.concatenate %74, %75 in 1 : vector<4x254xf32>, vector<4x2xf32> -> vector<4x256xf32>
    %77 = vector.shape_cast %73 : vector<1x256xi1> to vector<1x256xi1>
    %78 = vector.broadcast %77 : vector<1x256xi1> to vector<4x256xi1>
    %79 = arith.select %78, %76, %66 : vector<4x256xi1>, vector<4x256xf32>
    %c15_i32 = arith.constant 15 : i32
    %80 = vector.broadcast %c15_i32 : i32 to vector<1x256xi32>
    %81 = arith.andi %53, %80 : vector<1x256xi32>
    %c4_i32_33 = arith.constant 4 : i32
    %82 = vector.broadcast %c4_i32_33 : i32 to vector<1x256xi32>
    %83 = arith.cmpi sge, %81, %82 : vector<1x256xi32>
    %c8_i32 = arith.constant 8 : i32
    %84 = vector.broadcast %c8_i32 : i32 to vector<1x256xi32>
    %85 = arith.cmpi slt, %81, %84 : vector<1x256xi32>
    %86 = arith.andi %83, %85 : vector<1x256xi1>
    %87 = vector.extract_strided_slice %79 {offsets = [0, 4], sizes = [4, 252], strides = [1, 1]} : vector<4x256xf32> to vector<4x252xf32>
    %88 = vector.extract_strided_slice %79 {offsets = [0, 0], sizes = [4, 4], strides = [1, 1]} : vector<4x256xf32> to vector<4x4xf32>
    %89 = tpu.concatenate %87, %88 in 1 : vector<4x252xf32>, vector<4x4xf32> -> vector<4x256xf32>
    %90 = vector.shape_cast %86 : vector<1x256xi1> to vector<1x256xi1>
    %91 = vector.broadcast %90 : vector<1x256xi1> to vector<4x256xi1>
    %92 = arith.select %91, %89, %79 : vector<4x256xi1>, vector<4x256xf32>
    %c31_i32 = arith.constant 31 : i32
    %93 = vector.broadcast %c31_i32 : i32 to vector<1x256xi32>
    %94 = arith.andi %53, %93 : vector<1x256xi32>
    %c8_i32_34 = arith.constant 8 : i32
    %95 = vector.broadcast %c8_i32_34 : i32 to vector<1x256xi32>
    %96 = arith.cmpi sge, %94, %95 : vector<1x256xi32>
    %c16_i32 = arith.constant 16 : i32
    %97 = vector.broadcast %c16_i32 : i32 to vector<1x256xi32>
    %98 = arith.cmpi slt, %94, %97 : vector<1x256xi32>
    %99 = arith.andi %96, %98 : vector<1x256xi1>
    %100 = vector.extract_strided_slice %92 {offsets = [0, 8], sizes = [4, 248], strides = [1, 1]} : vector<4x256xf32> to vector<4x248xf32>
    %101 = vector.extract_strided_slice %92 {offsets = [0, 0], sizes = [4, 8], strides = [1, 1]} : vector<4x256xf32> to vector<4x8xf32>
    %102 = tpu.concatenate %100, %101 in 1 : vector<4x248xf32>, vector<4x8xf32> -> vector<4x256xf32>
    %103 = vector.shape_cast %99 : vector<1x256xi1> to vector<1x256xi1>
    %104 = vector.broadcast %103 : vector<1x256xi1> to vector<4x256xi1>
    %105 = arith.select %104, %102, %92 : vector<4x256xi1>, vector<4x256xf32>
    %c63_i32 = arith.constant 63 : i32
    %106 = vector.broadcast %c63_i32 : i32 to vector<1x256xi32>
    %107 = arith.andi %53, %106 : vector<1x256xi32>
    %c16_i32_35 = arith.constant 16 : i32
    %108 = vector.broadcast %c16_i32_35 : i32 to vector<1x256xi32>
    %109 = arith.cmpi sge, %107, %108 : vector<1x256xi32>
    %c32_i32 = arith.constant 32 : i32
    %110 = vector.broadcast %c32_i32 : i32 to vector<1x256xi32>
    %111 = arith.cmpi slt, %107, %110 : vector<1x256xi32>
    %112 = arith.andi %109, %111 : vector<1x256xi1>
    %113 = vector.extract_strided_slice %105 {offsets = [0, 16], sizes = [4, 240], strides = [1, 1]} : vector<4x256xf32> to vector<4x240xf32>
    %114 = vector.extract_strided_slice %105 {offsets = [0, 0], sizes = [4, 16], strides = [1, 1]} : vector<4x256xf32> to vector<4x16xf32>
    %115 = tpu.concatenate %113, %114 in 1 : vector<4x240xf32>, vector<4x16xf32> -> vector<4x256xf32>
    %116 = vector.shape_cast %112 : vector<1x256xi1> to vector<1x256xi1>
    %117 = vector.broadcast %116 : vector<1x256xi1> to vector<4x256xi1>
    %118 = arith.select %117, %115, %105 : vector<4x256xi1>, vector<4x256xf32>
    %c127_i32 = arith.constant 127 : i32
    %119 = vector.broadcast %c127_i32 : i32 to vector<1x256xi32>
    %120 = arith.andi %53, %119 : vector<1x256xi32>
    %c32_i32_36 = arith.constant 32 : i32
    %121 = vector.broadcast %c32_i32_36 : i32 to vector<1x256xi32>
    %122 = arith.cmpi sge, %120, %121 : vector<1x256xi32>
    %c64_i32 = arith.constant 64 : i32
    %123 = vector.broadcast %c64_i32 : i32 to vector<1x256xi32>
    %124 = arith.cmpi slt, %120, %123 : vector<1x256xi32>
    %125 = arith.andi %122, %124 : vector<1x256xi1>
    %126 = vector.extract_strided_slice %118 {offsets = [0, 32], sizes = [4, 224], strides = [1, 1]} : vector<4x256xf32> to vector<4x224xf32>
    %127 = vector.extract_strided_slice %118 {offsets = [0, 0], sizes = [4, 32], strides = [1, 1]} : vector<4x256xf32> to vector<4x32xf32>
    %128 = tpu.concatenate %126, %127 in 1 : vector<4x224xf32>, vector<4x32xf32> -> vector<4x256xf32>
    %129 = vector.shape_cast %125 : vector<1x256xi1> to vector<1x256xi1>
    %130 = vector.broadcast %129 : vector<1x256xi1> to vector<4x256xi1>
    %131 = arith.select %130, %128, %118 : vector<4x256xi1>, vector<4x256xf32>
    %c255_i32 = arith.constant 255 : i32
    %132 = vector.broadcast %c255_i32 : i32 to vector<1x256xi32>
    %133 = arith.andi %53, %132 : vector<1x256xi32>
    %c64_i32_37 = arith.constant 64 : i32
    %134 = vector.broadcast %c64_i32_37 : i32 to vector<1x256xi32>
    %135 = arith.cmpi sge, %133, %134 : vector<1x256xi32>
    %c128_i32 = arith.constant 128 : i32
    %136 = vector.broadcast %c128_i32 : i32 to vector<1x256xi32>
    %137 = arith.cmpi slt, %133, %136 : vector<1x256xi32>
    %138 = arith.andi %135, %137 : vector<1x256xi1>
    %139 = vector.extract_strided_slice %131 {offsets = [0, 64], sizes = [4, 192], strides = [1, 1]} : vector<4x256xf32> to vector<4x192xf32>
    %140 = vector.extract_strided_slice %131 {offsets = [0, 0], sizes = [4, 64], strides = [1, 1]} : vector<4x256xf32> to vector<4x64xf32>
    %141 = tpu.concatenate %139, %140 in 1 : vector<4x192xf32>, vector<4x64xf32> -> vector<4x256xf32>
    %142 = vector.shape_cast %138 : vector<1x256xi1> to vector<1x256xi1>
    %143 = vector.broadcast %142 : vector<1x256xi1> to vector<4x256xi1>
    %144 = arith.select %143, %141, %131 : vector<4x256xi1>, vector<4x256xf32>
    %145 = vector.extract_strided_slice %144 {offsets = [0, 0], sizes = [4, 128], strides = [1, 1]} : vector<4x256xf32> to vector<4x128xf32>
    %c0_38 = arith.constant 0 : index
    %c0_39 = arith.constant 0 : index
    %146 = vector.load %arg2[%c0_38, %c0_39] : memref<4x128xf32, #tpu.memory_space<vmem>>, vector<4x128xf32>
    tpu.vector_store %arg2[%c0_38, %c0_39], %145 {strides = array<i32>} : memref<4x128xf32, #tpu.memory_space<vmem>>, vector<4x128xf32>,
    return
  }
  func.func @transform_0(%arg0: i32) -> (i32, i32) {
    %c0_i32 = arith.constant 0 : i32
    %c0_i32_0 = arith.constant 0 : i32
    return %arg0, %c0_i32 : i32, i32
  }
  func.func @transform_1(%arg0: i32) -> (i32, i32) {
    %c0_i32 = arith.constant 0 : i32
    %c0_i32_0 = arith.constant 0 : i32
    return %arg0, %c0_i32 : i32, i32
  }
}

</mosaic_0001>

<bundles_post_ra>
// kernel: tpu_custom_call.1
= control target key start
LH: loop header
LB: loop body
LE: loop exit
PB: predicated region body
PF: predicated region fallthrough
CT: control target
= control target key end

     0   :  { %6 = vsyncpa [#allocation3], 0  ;;  %s118_s0 = inlined_call_operand.hbm [shape: f32[2,128], index: 0, kind: input, shape index: {}]   ;;  %s119_s1 = inlined_call_operand.hbm [shape: f32[2,128], index: 1, kind: output, shape index: {}]  }
   0x1   :  { %7 = vsyncpa [#allocation4], 0  ;;  %s13_s8 = sshll.u32 %s118_s0, 4  ;;  %s99_s9 = smov [#allocation2]   ;;  %s14_s8 = int_to_ptr.hbm [resolvable:$true] %s13_s8 }
   0x2   :  { %s15_s10 = sshll.u32 %s99_s9, 4  ;;  %s16_s10 = int_to_ptr.vmem [resolvable:$true] %s15_s10 }
   0x3   :  { %18 = dma.hbm_to_vmem [thread:$0]  %s14_s8, 32, %s16_s10, [#allocation3]  }
   0x4   :  { %95 = dma.done.wait [#allocation3], 32  }
   0x5   :  { %96 = vsyncadd [#allocation3], 4294967264  ;;  %v23_v0 = vld [vmem:[#allocation2] sm:$0x3]  ;;  %s100_s11 = smov 1   ;;  %s101_s12 = smov [#allocation5]  }
   0x6   :  { %24 = vrot.lane.b32.xlu0 %v23_v0, %s100_s11  ;;  %s32_s13 = sshll.u32 %s101_s12, 4  ;;  %s34_s16 = sshll.u32 %s119_s1, 4  ;;  %s33_s13 = int_to_ptr.vmem [resolvable:$true] %s32_s13  ;;  %s35_s16 = int_to_ptr.hbm [resolvable:$true] %s34_s16 }
  0x78   :  { %v25_v1 = vpop.permute.xlu0 %24 }
  0x79   :  { %26 = vst [vmem:[#allocation5] sm:$0x3] %v25_v1 }
  0x7a   :  { %37 = dma.vmem_to_hbm [thread:$0]  %s33_s13, 32, %s35_s16, [#allocation4]  }
  0x7b   :  { %97 = dma.done.wait [#allocation4], 32  }
  0x7c   :  { %98 = vsyncadd [#allocation4], 4294967264 }
  0x7d   :  { %42 = vsyncpa [#allocation3], 1 }
  0x7e   :  { %43 = vsyncpa [#allocation4], 1 }

// kernel: tpu_custom_call.1
= control target key start
LH: loop header
LB: loop body
LE: loop exit
PB: predicated region body
PF: predicated region fallthrough
CT: control target
= control target key end

     0   :  { %6 = vsyncpa [#allocation3], 0  ;;  %s495_s0 = inlined_call_operand.hbm [shape: f32[4,512], index: 0, kind: input, shape index: {}]   ;;  %s496_s1 = inlined_call_operand.hbm [shape: f32[4,128], index: 1, kind: output, shape index: {}]  }
   0x1   :  { %7 = vsyncpa [#allocation4], 0  ;;  %s13_s8 = sshll.u32 %s495_s0, 4  ;;  %s410_s9 = smov [#allocation2]   ;;  %s14_s8 = int_to_ptr.hbm [resolvable:$true] %s13_s8 }
   0x2   :  { %s15_s10 = sshll.u32 %s410_s9, 4  ;;  %s16_s10 = int_to_ptr.vmem [resolvable:$true] %s15_s10 }
   0x3   :  { %18 = dma.hbm_to_vmem [thread:$0]  %s14_s8, 256, %s16_s10, [#allocation3]  }
   0x4   :  { %406 = dma.done.wait [#allocation3], 256  }
   0x5   :  { %407 = vsyncadd [#allocation3], 4294967040  ;;  %v23_v0 = vld [vmem:[#allocation2] sm:$0xf]  ;;  %v35_v1 = vld [vmem:[#allocation2 + $0x8] sm:$0xf]  ;;  %v156_v60 = vlaneseq }
   0x6   :  { %s411_s11 = smov 112   ;;  %v29_v2 = vld [vmem:[#allocation2 + $0x4] sm:$0xf]  ;;  %v41_v3 = vld [vmem:[#allocation2 + $0xc] sm:$0xf]  ;;  %s412_s0 = smov 96  }
   0x7   :  { %25 = vrot.lane.b32.xlu0 %v23_v0, %s411_s11  ;;  %37 = vrot.lane.b32.xlu1 %v35_v1, %s411_s11  ;;  %s413_s12 = smov 80   ;;  %s414_s13 = smov 64   ;;  %vm121_vm0 = vcmask 130048   ;;  %vm123_vm1 = vcmask 261120   ;;  %vm125_vm2 = vcmask 392192   ;;  %vm127_vm3 = vcmask 523264  }
   0x8   :  { %s415_s14 = smov 48   ;;  %s416_s15 = smov 32   ;;  %vm129_vm4 = vcmask 654336   ;;  %vm131_vm5 = vcmask 785408   ;;  %vm133_vm6 = vcmask 916480   ;;  %vm148_vm7 = vcmask 1039360  }
   0x9   :  { %s417_s16 = smov 16   ;;  %s418_s17 = smov 127   ;;  %v460_v61 = vand.u32 127, %v156_v60 }
   0xa   :  { %s419_s18 = smov 126   ;;  %s420_s19 = smov 124  }
   0xb   :  { %v463_v62 = vadd.s32 128, %v460_v61  ;;  %s421_s20 = smov 120   ;;  %s422_s21 = smov [#allocation5]  }
   0xc   :  { %s333_s22 = sshll.u32 %s422_s21, 4  ;;  %s335_s25 = sshll.u32 %s496_s1, 4  ;;  %s334_s22 = int_to_ptr.vmem [resolvable:$true] %s333_s22  ;;  %s336_s25 = int_to_ptr.hbm [resolvable:$true] %s335_s25 }
   0xd   :  { %v160_v63 = vand.u32 3, %v463_v62 }
   0xf   :  { %31 = vrot.lane.b32.xlu0 %v29_v2, %s411_s11  ;;  %43 = vrot.lane.b32.xlu1 %v41_v3, %s411_s11  ;;  %vm162_vm8 = vcmp.ge.s32.totalorder %v160_v63, 1  ;;  %vm164_vm9 = vcmp.lt.s32.totalorder %v160_v63, 2 }
  0x10   :  { %vm166_vm12 = vmand %vm162_vm8, %vm164_vm9 }
  0x79   :  { %v26_v4 = vpop.permute.xlu0 %25  ;;  %v38_v14 = vpop.permute.xlu1 %37 }
  0x7a   :  { %v440_v5 = vmax.f32 %v23_v0, %v26_v4  ;;  %v40_v15 = vmax.f32 %v35_v1, %v38_v14  ;;  %v159_v0 = vand.u32 3, %v460_v61 }
  0x7c   :  { %48 = vst [vmem:[#allocation1] ss:$2 sm:$0xff] %v440_v5  ;;  %vm161_vm10 = vcmp.ge.s32.totalorder %v159_v0, 1  ;;  %vm163_vm11 = vcmp.lt.s32.totalorder %v159_v0, 2 }
  0x7d   :  { %vm165_vm13 = vmand %vm161_vm10, %vm163_vm11 }
  0x81   :  { %v32_v8 = vpop.permute.xlu0 %31  ;;  %v44_v19 = vpop.permute.xlu1 %43 }
  0x82   :  { %v34_v9 = vmax.f32 %v29_v2, %v32_v8  ;;  %v46_v20 = vmax.f32 %v41_v3, %v44_v19  ;;  %v184_v8 = vand.u32 7, %v460_v61 }
  0x83   :  { %v49_v6 = vld.sshfl [vmem:[#allocation1] sm:$0xff pattern:$0x75316420] }
  0x84   :  { %53 = vst [vmem:[#allocation1] ss:$2 sm:$0xff] %v440_v5  ;;  %50 = vrot.lane.b32.xlu2 %v49_v6, %s411_s11 }
  0x8b   :  { %v54_v7 = vld.sshfl [vmem:[#allocation1] sm:$0xff pattern:$0x75316420] }
  0x8c   :  { %58 = vst [vmem:[#allocation1] ss:$2 sm:$0xff] %v440_v5  ;;  %55 = vrot.lane.b32.xlu0 %v54_v7, %s412_s0  ;;  %v185_v7 = vand.u32 7, %v463_v62 }
  0x8e   :  { %vm187_vm14 = vcmp.ge.s32.totalorder %v185_v7, 2  ;;  %vm189_vm15 = vcmp.lt.s32.totalorder %v185_v7, 4 }
  0x93   :  { %v59_v10 = vld.sshfl [vmem:[#allocation1] sm:$0xff pattern:$0x75316420] }
  0x94   :  { %64 = vst [vmem:[#allocation1] ss:$2 sm:$0xff] %v34_v9  ;;  %60 = vrot.lane.b32.xlu2 %v59_v10, %s413_s12 }
  0x9b   :  { %v65_v11 = vld.sshfl [vmem:[#allocation1] sm:$0xff pattern:$0x75316420] }
  0x9c   :  { %69 = vst [vmem:[#allocation1] ss:$2 sm:$0xff] %v34_v9  ;;  %66 = vrot.lane.b32.xlu1 %v65_v11, %s414_s13 }
  0xa3   :  { %v70_v12 = vld.sshfl [vmem:[#allocation1] sm:$0xff pattern:$0x75316420] }
  0xa4   :  { %71 = vrot.lane.b32.xlu0 %v70_v12, %s415_s14  ;;  %74 = vst [vmem:[#allocation1] ss:$2 sm:$0xff] %v34_v9 }
  0xab   :  { %v75_v13 = vld.sshfl [vmem:[#allocation1] sm:$0xff pattern:$0x75316420] }
  0xac   :  { %76 = vrot.lane.b32.xlu2 %v75_v13, %s416_s15  ;;  %79 = vst [vmem:[#allocation1] ss:$2 sm:$0xff] %v34_v9 }
  0xb3   :  { %v80_v16 = vld.sshfl [vmem:[#allocation1] sm:$0xff pattern:$0x75316420] }
  0xb4   :  { %85 = vst [vmem:[#allocation1] ss:$2 sm:$0xff] %v40_v15 }
  0xbb   :  { %v86_v17 = vld.sshfl [vmem:[#allocation1] sm:$0xff pattern:$0x75316420] }
  0xbc   :  { %87 = vrot.lane.b32.xlu2 %v86_v17, %s411_s11  ;;  %90 = vst [vmem:[#allocation1] ss:$2 sm:$0xff] %v40_v15 }
  0xc3   :  { %v91_v18 = vld.sshfl [vmem:[#allocation1] sm:$0xff pattern:$0x75316420] }
  0xc4   :  { %92 = vrot.lane.b32.xlu1 %v91_v18, %s412_s0  ;;  %95 = vst [vmem:[#allocation1] ss:$2 sm:$0xff] %v40_v15 }
  0xcb   :  { %v96_v21 = vld.sshfl [vmem:[#allocation1] sm:$0xff pattern:$0x75316420] }
  0xcc   :  { %97 = vrot.lane.b32.xlu0 %v96_v21, %s413_s12  ;;  %101 = vst [vmem:[#allocation1] ss:$2 sm:$0xff] %v46_v20 }
  0xd3   :  { %v102_v22 = vld.sshfl [vmem:[#allocation1] sm:$0xff pattern:$0x75316420] }
  0xd4   :  { %103 = vrot.lane.b32.xlu2 %v102_v22, %s414_s13  ;;  %106 = vst [vmem:[#allocation1] ss:$2 sm:$0xff] %v46_v20 }
  0xdb   :  { %v107_v23 = vld.sshfl [vmem:[#allocation1] sm:$0xff pattern:$0x75316420] }
  0xdc   :  { %108 = vrot.lane.b32.xlu1 %v107_v23, %s415_s14  ;;  %111 = vst [vmem:[#allocation1] ss:$2 sm:$0xff] %v46_v20  ;;  %v237_v23 = vand.u32 31, %v463_v62 }
  0xde   :  { %v51_v26 = vpop.permute.xlu2 %50 }
  0xdf   :  { %v122_v34 = vsel %vm121_vm0, %v440_v5, %v51_v26 }
  0xe3   :  { %v112_v24 = vld.sshfl [vmem:[#allocation1] sm:$0xff pattern:$0x75316420] }
  0xe4   :  { %81 = vrot.lane.b32.xlu1 %v80_v16, %s417_s16  ;;  %113 = vrot.lane.b32.xlu0 %v112_v24, %s416_s15  ;;  %116 = vst [vmem:[#allocation1] ss:$2 sm:$0xff] %v46_v20  ;;  %v210_v16 = vand.u32 15, %v460_v61  ;;  %v236_v24 = vand.u32 31, %v460_v61 }
  0xe6   :  { %vm212_vm10 = vcmp.ge.s32.totalorder %v210_v16, 4  ;;  %vm214_vm11 = vcmp.lt.s32.totalorder %v210_v16, 8 }
  0xeb   :  { %v117_v25 = vld.sshfl [vmem:[#allocation1] sm:$0xff pattern:$0x75316420] }
  0xec   :  { %118 = vrot.lane.b32.xlu2 %v117_v25, %s417_s16 }
  0xee   :  { %v61_v27 = vpop.permute.xlu2 %60 }
  0xfe   :  { %v56_v28 = vpop.permute.xlu0 %55 }
  0xff   :  { %v124_v35 = vsel %vm123_vm1, %v122_v34, %v56_v28 }
 0x100   :  { %v126_v40 = vsel %vm125_vm2, %v124_v35, %v61_v27 }
 0x106   :  { %v77_v30 = vpop.permute.xlu2 %76 }
 0x10e   :  { %v67_v29 = vpop.permute.xlu1 %66 }
 0x10f   :  { %v128_v42 = vsel %vm127_vm3, %v126_v40, %v67_v29 }
 0x116   :  { %v72_v31 = vpop.permute.xlu0 %71  ;;  %v88_v33 = vpop.permute.xlu2 %87 }
 0x117   :  { %v135_v39 = vsel %vm121_vm0, %v40_v15, %v88_v33  ;;  %v130_v44 = vsel %vm129_vm4, %v128_v42, %v72_v31  ;;  %vm186_vm0 = vcmp.ge.s32.totalorder %v184_v8, 2  ;;  %v211_v15 = vand.u32 15, %v463_v62 }
 0x118   :  { %v132_v49 = vsel %vm131_vm5, %v130_v44, %v77_v30  ;;  %v263_v31 = vand.u32 63, %v463_v62 }
 0x119   :  { %vm215_vm9 = vcmp.lt.s32.totalorder %v211_v15, 8 }
 0x12e   :  { %v104_v38 = vpop.permute.xlu2 %103 }
 0x136   :  { %v93_v32 = vpop.permute.xlu1 %92 }
 0x137   :  { %v136_v41 = vsel %vm123_vm1, %v135_v39, %v93_v32  ;;  %vm188_vm1 = vcmp.lt.s32.totalorder %v184_v8, 4  ;;  %v262_v32 = vand.u32 63, %v460_v61  ;;  %v288_v39 = vand.u32 127, %v463_v62 }
 0x138   :  { %vm190_vm8 = vmand %vm186_vm0, %vm188_vm1  ;;  %vm241_vm0 = vcmp.lt.s32.totalorder %v237_v23, 16  ;;  %vm238_vm1 = vcmp.ge.s32.totalorder %v236_v24, 8 }
 0x13e   :  { %v98_v36 = vpop.permute.xlu0 %97 }
 0x13f   :  { %v137_v43 = vsel %vm125_vm2, %v136_v41, %v98_v36  ;;  %vm198_vm2 = vcmask 1031168  }
 0x140   :  { %v138_v45 = vsel %vm127_vm3, %v137_v43, %v104_v38 }
 0x146   :  { %v119_v50 = vpop.permute.xlu2 %118 }
 0x14e   :  { %v109_v37 = vpop.permute.xlu1 %108 }
 0x14f   :  { %v139_v46 = vsel %vm129_vm4, %v138_v45, %v109_v37  ;;  %vm191_vm4 = vmand %vm187_vm14, %vm189_vm15  ;;  %vm239_vm15 = vcmp.ge.s32.totalorder %v237_v23, 8 }
 0x150   :  { %vm216_vm14 = vmand %vm212_vm10, %vm214_vm11  ;;  %vm267_vm10 = vcmp.lt.s32.totalorder %v263_v31, 32  ;;  %vm264_vm11 = vcmp.ge.s32.totalorder %v262_v32, 16 }
 0x156   :  { %v82_v47 = vpop.permute.xlu1 %81  ;;  %v114_v48 = vpop.permute.xlu0 %113 }
 0x157   :  { %v140_v51 = vsel %vm131_vm5, %v139_v46, %v114_v48  ;;  %v134_v52 = vsel %vm133_vm6, %v132_v49, %v82_v47  ;;  %v312_v46 = vand.u32 255, %v460_v61 }
 0x158   :  { %144 = vrot.lane.b32.xlu0 %v134_v52, %s418_s17  ;;  %v141_v53 = vsel %vm133_vm6, %v140_v51, %v119_v50 }
 0x159   :  { %146 = vrot.lane.b32.xlu1 %v141_v53, %s418_s17 }
 0x1ca   :  { %v145_v54 = vpop.permute.xlu0 %144 }
 0x1cb   :  { %v147_v55 = vpop.permute.xlu1 %146 }
 0x1cc   :  { %v149_v56 = vsel %vm148_vm7, %v145_v54, %v147_v55  ;;  %v153_v57 = vsel %vm148_vm7, %v147_v55, %v145_v54 }
 0x1cd   :  { %v154_v58 = vmax.f32 %v134_v52, %v149_v56  ;;  %v155_v59 = vmax.f32 %v141_v53, %v153_v57 }
 0x1cf   :  { %171 = vrot.lane.b32.xlu0 %v155_v59, %s418_s17  ;;  %169 = vrot.lane.b32.xlu2 %v154_v58, %s418_s17 }
 0x229   :  { %v170_v1 = vpop.permute.xlu2 %169 }
 0x241   :  { %v172_v2 = vpop.permute.xlu0 %171 }
 0x242   :  { %v173_v3 = vsel %vm148_vm7, %v170_v1, %v172_v2  ;;  %v177_v4 = vsel %vm148_vm7, %v172_v2, %v170_v1  ;;  %vm213_vm7 = vcmp.ge.s32.totalorder %v211_v15, 4 }
 0x243   :  { %v183_v5 = vsel %vm166_vm12, %v177_v4, %v155_v59  ;;  %v182_v6 = vsel %vm165_vm13, %v173_v3, %v154_v58  ;;  %vm224_vm12 = vcmask 1014784   ;;  %vm217_vm13 = vmand %vm213_vm7, %vm215_vm9  ;;  %vm265_vm9 = vcmp.ge.s32.totalorder %v263_v31, 16 }
 0x244   :  { %196 = vrot.lane.b32.xlu2 %v183_v5, %s419_s18  ;;  %194 = vrot.lane.b32.xlu1 %v182_v6, %s419_s18 }
 0x29e   :  { %v197_v9 = vpop.permute.xlu2 %196 }
 0x2b6   :  { %v195_v10 = vpop.permute.xlu1 %194 }
 0x2b7   :  { %v199_v11 = vsel %vm198_vm2, %v195_v10, %v197_v9  ;;  %v203_v12 = vsel %vm198_vm2, %v197_v9, %v195_v10  ;;  %vm240_vm2 = vcmp.lt.s32.totalorder %v236_v24, 16 }
 0x2b8   :  { %v209_v13 = vsel %vm191_vm4, %v203_v12, %v183_v5  ;;  %v208_v14 = vsel %vm190_vm8, %v199_v11, %v182_v6  ;;  %vm250_vm4 = vcmask 982016   ;;  %vm243_vm8 = vmand %vm239_vm15, %vm241_vm0  ;;  %vm290_vm15 = vcmp.ge.s32.totalorder %v288_v39, 32 }
 0x2b9   :  { %222 = vrot.lane.b32.xlu1 %v209_v13, %s420_s19  ;;  %220 = vrot.lane.b32.xlu0 %v208_v14, %s420_s19  ;;  %vm242_vm7 = vmand %vm238_vm1, %vm240_vm2  ;;  %vm292_vm0 = vcmp.lt.s32.totalorder %v288_v39, 64  ;;  %vm289_vm1 = vcmp.ge.s32.totalorder %v460_v61, 32  ;;  %vm291_vm2 = vcmp.lt.s32.totalorder %v460_v61, 64 }
 0x32b   :  { %v223_v17 = vpop.permute.xlu1 %222  ;;  %v221_v18 = vpop.permute.xlu0 %220 }
 0x32c   :  { %v225_v19 = vsel %vm224_vm12, %v221_v18, %v223_v17  ;;  %v229_v20 = vsel %vm224_vm12, %v223_v17, %v221_v18  ;;  %vm266_vm12 = vcmp.lt.s32.totalorder %v262_v32, 32 }
 0x32d   :  { %v235_v21 = vsel %vm217_vm13, %v229_v20, %v209_v13  ;;  %v234_v22 = vsel %vm216_vm14, %v225_v19, %v208_v14  ;;  %vm269_vm13 = vmand %vm265_vm9, %vm267_vm10 }
 0x32e   :  { %248 = vrot.lane.b32.xlu0 %v235_v21, %s421_s20  ;;  %246 = vrot.lane.b32.xlu2 %v234_v22, %s421_s20  ;;  %vm268_vm14 = vmand %vm264_vm11, %vm266_vm12 }
 0x388   :  { %v247_v25 = vpop.permute.xlu2 %246 }
 0x3a0   :  { %v249_v26 = vpop.permute.xlu0 %248 }
 0x3a1   :  { %v251_v27 = vsel %vm250_vm4, %v247_v25, %v249_v26  ;;  %v255_v28 = vsel %vm250_vm4, %v249_v26, %v247_v25  ;;  %vm294_vm4 = vmand %vm290_vm15, %vm292_vm0 }
 0x3a2   :  { %v261_v29 = vsel %vm243_vm8, %v255_v28, %v235_v21  ;;  %v260_v30 = vsel %vm242_vm7, %v251_v27, %v234_v22  ;;  %vm293_vm8 = vmand %vm289_vm1, %vm291_vm2 }
 0x3a3   :  { %274 = vrot.lane.b32.xlu2 %v261_v29, %s411_s11  ;;  %272 = vrot.lane.b32.xlu1 %v260_v30, %s411_s11 }
 0x3fd   :  { %v275_v33 = vpop.permute.xlu2 %274 }
 0x415   :  { %v273_v34 = vpop.permute.xlu1 %272 }
 0x416   :  { %v276_v35 = vsel %vm133_vm6, %v273_v34, %v275_v33  ;;  %v280_v36 = vsel %vm133_vm6, %v275_v33, %v273_v34  ;;  %vm313_vm6 = vcmp.ge.s32.totalorder %v312_v46, 64 }
 0x417   :  { %v286_v37 = vsel %vm269_vm13, %v280_v36, %v261_v29  ;;  %v285_v38 = vsel %vm268_vm14, %v276_v35, %v260_v30 }
 0x418   :  { %299 = vrot.lane.b32.xlu1 %v286_v37, %s412_s0  ;;  %297 = vrot.lane.b32.xlu0 %v285_v38, %s412_s0 }
 0x48a   :  { %v300_v40 = vpop.permute.xlu1 %299  ;;  %v298_v41 = vpop.permute.xlu0 %297 }
 0x48b   :  { %v301_v42 = vsel %vm131_vm5, %v298_v41, %v300_v40  ;;  %v305_v43 = vsel %vm131_vm5, %v300_v40, %v298_v41 }
 0x48c   :  { %v311_v44 = vsel %vm294_vm4, %v305_v43, %v286_v37  ;;  %v310_v45 = vsel %vm293_vm8, %v301_v42, %v285_v38 }
 0x48d   :  { %320 = vrot.lane.b32.xlu0 %v311_v44, %s414_s13  ;;  %318 = vrot.lane.b32.xlu2 %v310_v45, %s414_s13 }
 0x4e7   :  { %v319_v47 = vpop.permute.xlu2 %318 }
 0x4ff   :  { %v321_v48 = vpop.permute.xlu0 %320 }
 0x500   :  { %v322_v49 = vsel %vm127_vm3, %v319_v47, %v321_v48 }
 0x501   :  { %v326_v50 = vsel %vm313_vm6, %v322_v49, %v310_v45 }
 0x502   :  { %327 = vst [vmem:[#allocation5] sm:$0xf] %v326_v50 }
 0x503   :  { %338 = dma.vmem_to_hbm [thread:$0]  %s334_s22, 64, %s336_s25, [#allocation4]  }
 0x504   :  { %408 = dma.done.wait [#allocation4], 64  }
 0x505   :  { %409 = vsyncadd [#allocation4], 4294967232 }
 0x506   :  { %343 = vsyncpa [#allocation3], 1 }
 0x507   :  { %344 = vsyncpa [#allocation4], 1 }

</bundles_post_ra>
